<compile_context>
chip_gen: v7x
topology: tpu7x:2x2x1
jax: 0.10.0
libtpu: 0.0.40
codegen_flags: <defaults>
</compile_context>

<pallas_src>
import math
import functools

import jax
import jax.numpy as jnp
from jax import lax
from jax.experimental import pallas as pl
from jax.experimental.pallas import tpu as pltpu


# ----------------------------------------------------------------------------
# helpers
# ----------------------------------------------------------------------------
def _pick_tile(dim, target, multiple):
    """Largest t <= target with dim % t == 0 and (t % multiple == 0 or t == dim)."""
    if dim <= target:
        return dim
    t = (target // multiple) * multiple
    while t >= multiple:
        if dim % t == 0:
            return t
        t -= multiple
    return dim


# ----------------------------------------------------------------------------
# Kernel 1: fused input projection
#   out[b, p, s, :] = x[b, s, :] @ w[p] + b[p]        (p in {q,k,v} or just one)
# Grid (B, S/ts, D/tk): x is read from HBM exactly once; every dot has
# N = d_model (full MXU width); f32 accumulator initialized with the bias.
# ----------------------------------------------------------------------------
def _proj_kernel(x_ref, w_ref, b_ref, o_ref, acc_ref):
    ki = pl.program_id(2)

    @pl.when(ki == 0)
    def _init():
        acc_ref[...] = jnp.broadcast_to(
            b_ref[...].astype(jnp.float32), acc_ref.shape)

    x = x_ref[...]                       # [ts, tk]
    if x.dtype != w_ref.dtype:           # only the activation is cast (weights
        x = x.astype(w_ref.dtype)        # are already stored in the MXU dtype)
    for p in range(w_ref.shape[0]):      # P = 1 (single) or 3 (fused QKV)
        acc_ref[p] += jnp.dot(x, w_ref[p], preferred_element_type=jnp.float32)

    @pl.when(ki == pl.num_programs(2) - 1)
    def _fin():
        o_ref[...] = acc_ref[...].astype(o_ref.dtype)


def fused_proj(x, w, b, *, row_block=None, k_block=None, out_dtype=None):
    """x: [B, S, Din], w: [P, Din, Dout], b: [P, 1, Dout] -> [B, P, S, Dout]."""
    B, S, Din = x.shape
    P, Dw, Dout = w.shape
    assert Dw == Din
    out_dtype = out_dtype or x.dtype

    ts = row_block or _pick_tile(S, 512, 8)      # big row tile -> fewer weight re-reads
    tk = k_block or _pick_tile(Din, 512, 128)
    assert S % ts == 0 and Din % tk == 0, (S, ts, Din, tk)

    grid = (B, S // ts, Din // tk)
    flops = 2 * B * S * P * Dout * Din
    bytes_accessed = int(
        x.size * x.dtype.itemsize                              # x read once
        + (B * S // ts) * w.size * w.dtype.itemsize            # w per row tile
        + B * P * S * Dout * jnp.dtype(out_dtype).itemsize)    # output once

    return pl.pallas_call(
        _proj_kernel,
        grid=grid,
        out_shape=jax.ShapeDtypeStruct((B, P, S, Dout), out_dtype),
        in_specs=[
            pl.BlockSpec((None, ts, tk), lambda bi, si, ki: (bi, si, ki)),
            pl.BlockSpec((P, tk, Dout), lambda bi, si, ki: (0, ki, 0)),
            pl.BlockSpec((P, 1, Dout), lambda bi, si, ki: (0, 0, 0)),
        ],
        out_specs=pl.BlockSpec((None, P, ts, Dout),
                               lambda bi, si, ki: (bi, 0, si, 0)),
        scratch_shapes=[pltpu.VMEM((P, ts, Dout), jnp.float32)],
        compiler_params=pltpu.CompilerParams(
            dimension_semantics=("parallel", "parallel", "arbitrary")),
        cost_estimate=pl.CostEstimate(flops=flops, transcendentals=0,
                                      bytes_accessed=bytes_accessed),
    )(x, w, b)


# ----------------------------------------------------------------------------
# Kernel 2: attention with VMEM-resident K/V.
# Grid (B, S/tq).  q block = [tq, d_model]; K and V blocks = [S, d_model] whose
# index_map ignores the row-block axis -> Pallas keeps them resident in VMEM
# across consecutive q blocks (fetched from HBM once per batch element).
# Heads are split inside the kernel (lane slices); softmax stays local.
# Output ctx is a lane-dense [B, S, d_model] slab.
# ----------------------------------------------------------------------------
def _mha_attention_kernel(q_ref, k_ref, v_ref, o_ref, *, num_heads, d_k,
                          softmax_dtype):
    q = q_ref[...]                       # [tq, D]
    k = k_ref[...]                       # [S,  D]  (VMEM resident)
    v = v_ref[...]                       # [S,  D]  (VMEM resident)

    ctx_heads = []
    for hh in range(num_heads):
        lo = hh * d_k
        q_h = q[:, lo:lo + d_k]
        k_h = k[:, lo:lo + d_k]
        v_h = v[:, lo:lo + d_k]

        # scores [tq, S] in f32; 1/sqrt(d_k) is folded into the Q projection.
        s = lax.dot_general(q_h, k_h, (((1,), (1,)), ((), ())),
                            preferred_element_type=jnp.float32)
        m = jnp.max(s, axis=-1, keepdims=True)
        # exp in bf16 on v6e/v7x (EUP bf16) when feeding the MXU in bf16;
        # row max / sum / normalization stay in f32.
        p = jnp.exp((s - m).astype(softmax_dtype))
        l = jnp.sum(p.astype(jnp.float32), axis=-1, keepdims=True)
        ctx_h = jnp.dot(p, v_h, preferred_element_type=jnp.float32)  # [tq, d_k]
        ctx_heads.append(ctx_h * pl.reciprocal(l, approx=True))

    o_ref[...] = jnp.concatenate(ctx_heads, axis=-1).astype(o_ref.dtype)


def mha_attention(q_arr, k_arr, v_arr, num_heads, *, q_idx=0, k_idx=0, v_idx=0,
                  q_block=None, out_dtype=None, softmax_dtype=jnp.float32):
    """q/k/v arrays: [B, P, S, d_model] lane-dense projections.

    The three operands may alias the same fused-QKV array; q_idx/k_idx/v_idx
    select the projection slot purely via index_map arithmetic.
    Returns lane-dense ctx [B, S, d_model].
    """
    B, _, S, D = q_arr.shape
    assert D % num_heads == 0
    d_k = D // num_heads
    out_dtype = out_dtype or q_arr.dtype

    # NOTE(v5e): prefer tq=128 there (single store slot / vreg spill pressure).
    tq = q_block or _pick_tile(S, 256, 8)
    assert S % tq == 0, (S, tq)

    grid = (B, S // tq)

    # Explicit VMEM budget (review: v7x has 64 MiB physical / 32 MiB default
    # scoped VMEM). Resident K/V is double-buffered; keep 2*2*S*D*itemsize well
    # under ~24 MiB on v7x (fall back to a KV-chunked variant for very long S).
    itemsize = jnp.dtype(q_arr.dtype).itemsize
    resident_kv = 2 * 2 * S * D * itemsize
    streamed = 2 * 2 * tq * D * (itemsize + jnp.dtype(out_dtype).itemsize)
    vmem_limit = int(min(max(resident_kv + streamed + (8 << 20), 32 << 20),
                         120 << 20))

    flops = 4 * B * S * S * D
    transcendentals = B * num_heads * S * S
    bytes_accessed = int(3 * B * S * D * itemsize
                         + B * S * D * jnp.dtype(out_dtype).itemsize)

    def _q_map(pi):
        return lambda bi, qi: (bi, pi, qi, 0)

    def _kv_map(pi):
        return lambda bi, qi: (bi, pi, 0, 0)      # constant in qi -> resident

    kernel = functools.partial(_mha_attention_kernel, num_heads=num_heads,
                               d_k=d_k, softmax_dtype=softmax_dtype)
    return pl.pallas_call(
        kernel,
        grid=grid,
        out_shape=jax.ShapeDtypeStruct((B, S, D), out_dtype),
        in_specs=[
            pl.BlockSpec((None, None, tq, D), _q_map(q_idx)),
            pl.BlockSpec((None, None, S, D), _kv_map(k_idx)),
            pl.BlockSpec((None, None, S, D), _kv_map(v_idx)),
        ],
        out_specs=pl.BlockSpec((None, tq, D), lambda bi, qi: (bi, qi, 0)),
        compiler_params=pltpu.CompilerParams(
            dimension_semantics=("parallel", "arbitrary"),
            vmem_limit_bytes=vmem_limit),
        cost_estimate=pl.CostEstimate(flops=flops,
                                      transcendentals=transcendentals,
                                      bytes_accessed=bytes_accessed),
    )(q_arr, k_arr, v_arr)


# ----------------------------------------------------------------------------
# Kernel 3: output projection - plain tiled matmul with full-depth (d_model)
# contraction on lane-dense ctx, lane-dense [B, S, d_model] output.
# ----------------------------------------------------------------------------
def _out_proj_kernel(x_ref, w_ref, b_ref, o_ref, acc_ref):
    ki = pl.program_id(3)

    @pl.when(ki == 0)
    def _init():
        acc_ref[...] = jnp.broadcast_to(
            b_ref[...].astype(jnp.float32), acc_ref.shape)

    x = x_ref[...]
    if x.dtype != w_ref.dtype:
        x = x.astype(w_ref.dtype)
    acc_ref[...] += jnp.dot(x, w_ref[...], preferred_element_type=jnp.float32)

    @pl.when(ki == pl.num_programs(3) - 1)
    def _fin():
        o_ref[...] = acc_ref[...].astype(o_ref.dtype)


def out_proj(x, w, b, *, row_block=None, n_block=None, k_block=None,
             out_dtype=None):
    """x: [B, S, Din] (lane-dense ctx), w: [Din, Dout], b: [1, Dout] -> [B, S, Dout]."""
    B, S, Din = x.shape
    Dw, Dout = w.shape
    assert Dw == Din
    out_dtype = out_dtype or x.dtype

    ts = row_block or _pick_tile(S, 512, 8)
    tn = n_block or _pick_tile(Dout, 512, 128)
    tk = k_block or _pick_tile(Din, 512, 128)
    assert S % ts == 0 and Dout % tn == 0 and Din % tk == 0

    grid = (B, S // ts, Dout // tn, Din // tk)
    flops = 2 * B * S * Dout * Din
    bytes_accessed = int(
        (Dout // tn) * x.size * x.dtype.itemsize
        + (B * S // ts) * w.size * w.dtype.itemsize
        + B * S * Dout * jnp.dtype(out_dtype).itemsize)

    return pl.pallas_call(
        _out_proj_kernel,
        grid=grid,
        out_shape=jax.ShapeDtypeStruct((B, S, Dout), out_dtype),
        in_specs=[
            pl.BlockSpec((None, ts, tk), lambda bi, si, ni, ki: (bi, si, ki)),
            pl.BlockSpec((tk, tn), lambda bi, si, ni, ki: (ki, ni)),
            pl.BlockSpec((1, tn), lambda bi, si, ni, ki: (0, ni)),
        ],
        out_specs=pl.BlockSpec((None, ts, tn),
                               lambda bi, si, ni, ki: (bi, si, ni)),
        scratch_shapes=[pltpu.VMEM((ts, tn), jnp.float32)],
        compiler_params=pltpu.CompilerParams(
            dimension_semantics=("parallel", "parallel", "parallel",
                                 "arbitrary")),
        cost_estimate=pl.CostEstimate(flops=flops, transcendentals=0,
                                      bytes_accessed=bytes_accessed),
    )(x, w, b)


# ----------------------------------------------------------------------------
# Module wrapper
# ----------------------------------------------------------------------------
class MultiHeadedAttentionPallas:
    def __init__(self, h, d_model, key, dtype=jnp.float32,
                 mxu_dtype=jnp.bfloat16,            # bf16 MXU feeding by default
                 row_block=None, k_block=None, n_block=None, q_block=None):
        assert d_model % h == 0
        self.h = h
        self.d_k = d_model // h
        self.d_model = d_model
        self.mxu_dtype = mxu_dtype
        self.row_block = row_block
        self.k_block = k_block
        self.n_block = n_block
        self.q_block = q_block

        # 4 x Linear(d_model, d_model); PyTorch default init U(-1/sqrt(in), +1/sqrt(in)).
        bound = 1.0 / math.sqrt(d_model)
        keys = jax.random.split(key, 8)
        self.weights = [jax.random.uniform(keys[2 * i], (d_model, d_model),
                                           dtype, -bound, bound)
                        for i in range(4)]
        self.biases = [jax.random.uniform(keys[2 * i + 1], (d_model,), dtype,
                                          -bound, bound)
                       for i in range(4)]

        # --- kernel-layout parameters: lane-dense, pre-transposed, pre-scaled,
        #     stored directly in the MXU feed dtype (no per-tile casts). ---
        wdt = mxu_dtype if mxu_dtype is not None else dtype
        scale = 1.0 / math.sqrt(self.d_k)           # folded into the Q projection
        wq, wk, wv, wo = self.weights
        bq, bk, bv, bo = self.biases

        def prep_w(w, s=1.0):                       # PyTorch [Dout, Din] -> [Din, Dout]
            return (w.T * s).astype(wdt)

        self.w_q = prep_w(wq, scale)[None]          # [1, D, D]
        self.w_k = prep_w(wk)[None]
        self.w_v = prep_w(wv)[None]
        self.w_qkv = jnp.concatenate([self.w_q, self.w_k, self.w_v], 0)  # [3, D, D]
        # biases stay f32: they seed the f32 accumulator, negligible traffic.
        self.b_q = (bq * scale).astype(jnp.float32)[None, None]          # [1, 1, D]
        self.b_k = bk.astype(jnp.float32)[None, None]
        self.b_v = bv.astype(jnp.float32)[None, None]
        self.b_qkv = jnp.concatenate([self.b_q, self.b_k, self.b_v], 0)  # [3, 1, D]
        self.w_out = prep_w(wo)                                          # [D, D]
        self.b_out = bo.astype(jnp.float32)[None]                        # [1, D]

        self.attn = None  # TODO(synk): p_attn not materialized (fused in-VMEM softmax)

    def __call__(self, query, key, value):
        B, S, D = query.shape
        assert D == self.d_model
        md = self.mxu_dtype
        inter_dtype = md if md is not None else query.dtype
        softmax_dtype = md if md is not None else jnp.float32

        if (query is key) and (key is value):
            # Self-attention fast path: ONE fused QKV matmul (x read once,
            # MXU N = 3 separate full-width dots over the same x tile).
            qkv = fused_proj(query, self.w_qkv, self.b_qkv,
                             row_block=self.row_block, k_block=self.k_block,
                             out_dtype=inter_dtype)                # [B, 3, S, D]
            ctx = mha_attention(qkv, qkv, qkv, self.h,
                                q_idx=0, k_idx=1, v_idx=2,
                                q_block=self.q_block, out_dtype=inter_dtype,
                                softmax_dtype=softmax_dtype)       # [B, S, D]
        else:
            q_arr = fused_proj(query, self.w_q, self.b_q,
                               row_block=self.row_block, k_block=self.k_block,
                               out_dtype=inter_dtype)
            k_arr = fused_proj(key, self.w_k, self.b_k,
                               row_block=self.row_block, k_block=self.k_block,
                               out_dtype=inter_dtype)
            v_arr = fused_proj(value, self.w_v, self.b_v,
                               row_block=self.row_block, k_block=self.k_block,
                               out_dtype=inter_dtype)
            ctx = mha_attention(q_arr, k_arr, v_arr, self.h,
                                q_block=self.q_block, out_dtype=inter_dtype,
                                softmax_dtype=softmax_dtype)

        return out_proj(ctx, self.w_out, self.b_out,
                        row_block=self.row_block, n_block=self.n_block,
                        k_block=self.k_block, out_dtype=query.dtype)


# ----------------------------------------------------------------------------
# Pure-JAX reference (uses the f32 master weights)
# ----------------------------------------------------------------------------
def reference_mha(mha, query, key, value):
    B, S, D = query.shape
    h, d_k = mha.h, mha.d_k

    def lin(x, w, b):
        return x @ w.T + b

    q = lin(query, mha.weights[0], mha.biases[0]).reshape(B, S, h, d_k).transpose(0, 2, 1, 3)
    k = lin(key, mha.weights[1], mha.biases[1]).reshape(B, S, h, d_k).transpose(0, 2, 1, 3)
    v = lin(value, mha.weights[2], mha.biases[2]).reshape(B, S, h, d_k).transpose(0, 2, 1, 3)

    scores = jnp.einsum("bhqd,bhkd->bhqk", q, k) / math.sqrt(d_k)
    p = jax.nn.softmax(scores, axis=-1)
    ctx = jnp.einsum("bhqk,bhkd->bhqd", p, v)
    x = ctx.transpose(0, 2, 1, 3).reshape(B, S, h * d_k)
    return lin(x, mha.weights[3], mha.biases[3])


# ----------------------------------------------------------------------------
if __name__ == "__main__":
    B, S, d_model, h = 2, 32, 32, 4   # d_k = 8

    root = jax.random.PRNGKey(0)
    k_param, k_q, k_k, k_v = jax.random.split(root, 4)

    query = jax.random.normal(k_q, (B, S, d_model), jnp.float32)
    key = jax.random.normal(k_k, (B, S, d_model), jnp.float32)
    value = jax.random.normal(k_v, (B, S, d_model), jnp.float32)

    # Small tile overrides so the toy shapes still exercise multi-block row
    # pipelining and the resident-K/V reuse across several q blocks.
    mha_f32 = MultiHeadedAttentionPallas(h, d_model, k_param, mxu_dtype=None,
                                         row_block=16, q_block=8)
    ref = reference_mha(mha_f32, query, key, value)

    # 1) distinct q/k/v (cross-attention style), f32 feed
    out = jax.block_until_ready(mha_f32(query, key, value))
    assert out.shape == (B, S, d_model), out.shape
    err = float(jnp.max(jnp.abs(out - ref)))
    assert err < 2e-2, err

    # 2) self-attention fast path (single fused QKV projection)
    ref_self = reference_mha(mha_f32, query, query, query)
    out_self = jax.block_until_ready(mha_f32(query, query, query))
    err_self = float(jnp.max(jnp.abs(out_self - ref_self)))
    assert err_self < 2e-2, err_self

    # 3) default bf16-MXU build (bf16 weights/intermediates, f32 accumulation,
    #    f32 softmax stats, bf16 exp) - looser tolerance vs f32 reference.
    mha_bf16 = MultiHeadedAttentionPallas(h, d_model, k_param,
                                          row_block=16, q_block=8)
    out_bf16 = jax.block_until_ready(mha_bf16(query, key, value))
    err_bf16 = float(jnp.max(jnp.abs(out_bf16 - ref)))
    assert err_bf16 < 1.5e-1, err_bf16

    print("KERNEL_OK")
</pallas_src>

<mosaic_0001>
module attributes {stable_mosaic.version = 11 : i64} {
  func.func @_proj_kernel(%arg0: i32, %arg1: i32, %arg2: i32, %arg3: memref<1x16x32xf32, #tpu.memory_space<vmem>>, %arg4: memref<1x32x32xf32, #tpu.memory_space<vmem>>, %arg5: memref<1x1x32xf32, #tpu.memory_space<vmem>>, %arg6: memref<1x1x16x32xf32, #tpu.memory_space<vmem>>, %arg7: memref<1x16x32xf32, #tpu.memory_space<vmem>>) attributes {dimension_semantics = [#tpu.dimension_semantics<parallel>, #tpu.dimension_semantics<parallel>, #tpu.dimension_semantics<arbitrary>], iteration_bounds = array<i64: 2, 2, 1>, scalar_prefetch = 0 : i64, scratch_operands = 1 : i64, tpu.core_type = #tpu.core_type<tc>, window_params = [{transform_indices = @transform_0, window_bounds = array<i64: 1, 16, 32>}, {transform_indices = @transform_1, window_bounds = array<i64: 1, 32, 32>}, {pipeline_mode = #tpu.pipeline_mode<synchronous>, transform_indices = @transform_2, window_bounds = array<i64: 1, 1, 32>}, {transform_indices = @transform_3, window_bounds = array<i64: 1, 1, 16, 32>}]} {
    %c0_i32 = arith.constant 0 : i32
    %0 = arith.cmpi eq, %arg2, %c0_i32 : i32
    %1 = arith.extui %0 : i1 to i32
    %c0_i32_0 = arith.constant 0 : i32
    %2 = arith.cmpi ne, %1, %c0_i32_0 : i32
    scf.if %2 {
      %c0_14 = arith.constant 0 : index
      %c0_15 = arith.constant 0 : index
      %c0_16 = arith.constant 0 : index
      %17 = vector.load %arg5[%c0_14, %c0_15, %c0_16] : memref<1x1x32xf32, #tpu.memory_space<vmem>>, vector<1x1x32xf32>
      %18 = vector.shape_cast %17 : vector<1x1x32xf32> to vector<1x1x32xf32>
      %19 = vector.broadcast %18 : vector<1x1x32xf32> to vector<1x16x32xf32>
      %c0_17 = arith.constant 0 : index
      %c0_18 = arith.constant 0 : index
      %c0_19 = arith.constant 0 : index
      %20 = vector.load %arg7[%c0_17, %c0_18, %c0_19] : memref<1x16x32xf32, #tpu.memory_space<vmem>>, vector<1x16x32xf32>
      tpu.vector_store %arg7[%c0_17, %c0_18, %c0_19], %19 {strides = array<i32>} : memref<1x16x32xf32, #tpu.memory_space<vmem>>, vector<1x16x32xf32>,
    } else {
    }
    %c0 = arith.constant 0 : index
    %c0_1 = arith.constant 0 : index
    %c0_2 = arith.constant 0 : index
    %3 = vector.load %arg3[%c0, %c0_1, %c0_2] : memref<1x16x32xf32, #tpu.memory_space<vmem>>, vector<1x16x32xf32>
    %4 = vector.shape_cast %3 : vector<1x16x32xf32> to vector<16x32xf32>
    %c0_3 = arith.constant 0 : index
    %c0_4 = arith.constant 0 : index
    %c0_5 = arith.constant 0 : index
    %5 = vector.load %arg7[%c0_3, %c0_4, %c0_5] : memref<1x16x32xf32, #tpu.memory_space<vmem>>, vector<1x16x32xf32>
    %6 = vector.shape_cast %5 : vector<1x16x32xf32> to vector<16x32xf32>
    %c0_6 = arith.constant 0 : index
    %c0_7 = arith.constant 0 : index
    %c0_8 = arith.constant 0 : index
    %7 = vector.load %arg4[%c0_6, %c0_7, %c0_8] : memref<1x32x32xf32, #tpu.memory_space<vmem>>, vector<1x32x32xf32>
    %8 = vector.shape_cast %7 : vector<1x32x32xf32> to vector<32x32xf32>
    %cst = arith.constant dense<0.000000e+00> : vector<16x32xf32>
    %9 = tpu.matmul %4, %8, %cst {dimension_numbers = #tpu.dot_dimension_numbers<[1], [0], [0], [1], [0, 0, 1, 1], [], []>} : vector<16x32xf32>, vector<32x32xf32>, vector<16x32xf32> -> vector<16x32xf32>
    %10 = arith.addf %6, %9 : vector<16x32xf32>
    %c0_9 = arith.constant 0 : index
    %c0_10 = arith.constant 0 : index
    %c0_11 = arith.constant 0 : index
    %11 = vector.load %arg7[%c0_9, %c0_10, %c0_11] : memref<1x16x32xf32, #tpu.memory_space<vmem>>, vector<1x16x32xf32>
    %12 = vector.shape_cast %11 : vector<1x16x32xf32> to vector<16x32xf32>
    %13 = vector.shape_cast %10 : vector<16x32xf32> to vector<1x16x32xf32>
    tpu.vector_store %arg7[%c0_9, %c0_10, %c0_11], %13 {strides = array<i32>} : memref<1x16x32xf32, #tpu.memory_space<vmem>>, vector<1x16x32xf32>,
    %c0_i32_12 = arith.constant 0 : i32
    %14 = arith.cmpi eq, %arg2, %c0_i32_12 : i32
    %15 = arith.extui %14 : i1 to i32
    %c0_i32_13 = arith.constant 0 : i32
    %16 = arith.cmpi ne, %15, %c0_i32_13 : i32
    scf.if %16 {
      %c0_14 = arith.constant 0 : index
      %c0_15 = arith.constant 0 : index
      %c0_16 = arith.constant 0 : index
      %17 = vector.load %arg7[%c0_14, %c0_15, %c0_16] : memref<1x16x32xf32, #tpu.memory_space<vmem>>, vector<1x16x32xf32>
      %c0_17 = arith.constant 0 : index
      %c0_18 = arith.constant 0 : index
      %c0_19 = arith.constant 0 : index
      %c0_20 = arith.constant 0 : index
      %18 = vector.load %arg6[%c0_17, %c0_18, %c0_19, %c0_20] : memref<1x1x16x32xf32, #tpu.memory_space<vmem>>, vector<1x1x16x32xf32>
      %19 = vector.shape_cast %18 : vector<1x1x16x32xf32> to vector<1x16x32xf32>
      %20 = vector.shape_cast %17 : vector<1x16x32xf32> to vector<1x1x16x32xf32>
      tpu.vector_store %arg6[%c0_17, %c0_18, %c0_19, %c0_20], %20 {strides = array<i32>} : memref<1x1x16x32xf32, #tpu.memory_space<vmem>>, vector<1x1x16x32xf32>,
    } else {
    }
    return
  }
  func.func @transform_0(%arg0: i32, %arg1: i32, %arg2: i32) -> (i32, i32, i32) {
    %c0_i32 = arith.constant 0 : i32
    return %arg0, %arg1, %arg2 : i32, i32, i32
  }
  func.func @transform_1(%arg0: i32, %arg1: i32, %arg2: i32) -> (i32, i32, i32) {
    %c0_i32 = arith.constant 0 : i32
    %c0_i32_0 = arith.constant 0 : i32
    %c0_i32_1 = arith.constant 0 : i32
    return %c0_i32, %arg2, %c0_i32_0 : i32, i32, i32
  }
  func.func @transform_2(%arg0: i32, %arg1: i32, %arg2: i32) -> (i32, i32, i32) {
    %c0_i32 = arith.constant 0 : i32
    %c0_i32_0 = arith.constant 0 : i32
    %c0_i32_1 = arith.constant 0 : i32
    %c0_i32_2 = arith.constant 0 : i32
    return %c0_i32, %c0_i32_0, %c0_i32_1 : i32, i32, i32
  }
  func.func @transform_3(%arg0: i32, %arg1: i32, %arg2: i32) -> (i32, i32, i32, i32) {
    %c0_i32 = arith.constant 0 : i32
    %c0_i32_0 = arith.constant 0 : i32
    %c0_i32_1 = arith.constant 0 : i32
    return %arg0, %c0_i32, %arg1, %c0_i32_0 : i32, i32, i32, i32
  }
}

</mosaic_0001>

<bundles_post_ra>
// kernel: tpu_custom_call.1
= control target key start
LH: loop header
LB: loop body
LE: loop exit
PB: predicated region body
PF: predicated region fallthrough
CT: control target
= control target key end

     0   :  { %s1073_s0 = inlined_call_operand.hbm [shape: f32[2,32,32], index: 0, kind: input, shape index: {}]   ;;  %s1074_s1 = inlined_call_operand.hbm [shape: f32[1,32,32], index: 1, kind: input, shape index: {}]   ;;  %s1075_s2 = inlined_call_operand.vmem [shape: f32[1,1,32], index: 2, kind: input, shape index: {}]   ;;  %s1076_s3 = inlined_call_operand.hbm [shape: f32[2,1,32,32], index: 3, kind: output, shape index: {}]  }
   0x1   :  { %1087 = sst [smem:[#allocation16_spill]] %s1074_s1 }
   0x2   :  { %8 = vsyncpa [#allocation4], 0 }
   0x3   :  { %10 = vsyncpa [#allocation4 + $0x1], 0 }
   0x4   :  { %11 = vsyncpa [#allocation7], 0 }
   0x5   :  { %12 = vsyncpa [#allocation5], 0 }
   0x6   :  { %14 = vsyncpa [#allocation5 + $0x1], 0  ;;  %s809_s12 = smov 0   ;;  %s811_s13 = smov 0  }
   0x7   :  { %s813_s14 = smov 0   ;;  %s815_s15 = smov 0  }
   0x8   :  { %s817_s16 = smov 0   ;;  %s819_s17 = smov 0  }
   0x9   :  { %s821_s18 = smov 0   ;;  %s823_s19 = smov 0  }
   0xa LB: > { %1088 = sst [smem:[#allocation12_spill]] %s772_s17  ;;  %s480_s20 = sadd.s32 4294967295, %s780_s19   ;;  %s780_s19 = sphi %s823_s19, %s20_s19   ;;  %s776_s18 = sphi %s821_s18, %s1117_s18   ;;  %s772_s17 = sphi %s819_s17, %s1111_s17   ;;  %s768_s16 = sphi %s817_s16, %s1116_s16   ;;  %s764_s15 = sphi %s815_s15, %s1110_s15   ;;  %s760_s14 = sphi %s813_s14, %s1115_s14   ;;  %s756_s13 = sphi %s811_s13, %s1114_s13   ;;  %s752_s12 = sphi %s809_s12, %s1113_s12  }
   0xb   : > { %s481_s21 = sadd.s32 4294967294, %s780_s19   ;;  %p63_p0 = scmp.ne.s32.totalorder %s756_s13, %s752_s12 }
   0xc   : > { %p853_p1 = scmp.eq.s32.totalorder %s480_s20, 0  ;;  %p857_p2 = scmp.eq.s32.totalorder %s480_s20, 3 }
   0xd   : > { %p142_p3 = scmp.eq.s32.totalorder %s481_s21, 3  ;;  %p482_p5 = scmp.ge.s32.totalorder %s780_s19, 1 }
   0xe   : > { %s1089_s22 = scalar_select %p853_p1, 1, 0 }
   0xf   : > { %s1090_s23 = scalar_select %p857_p2, 1, 0 }
  0x10   : > { %p863_p4 = por %p853_p1, %p63_p0  ;;  %p868_p6 = por %p142_p3, %p63_p0 }
  0x11   : > { %p149_p7 = scmp.lt.s32.totalorder %s780_s19, 5  ;;  %s782_s27 = smov [#allocation6]  }
  0x12   : > { %s1091_s24 = scalar_select %p863_p4, 1, 0 }
  0x13   : > { %s1092_s25 = scalar_select %p868_p6, 1, 0 }
  0x14   : > { %p873_p8 = pnand %p482_p5, %p149_p7  ;;  %s164_s28 = sshll.u32 %s782_s27, 4  ;;  %s165_s28 = int_to_ptr.vmem [resolvable:$true] %s164_s28 }
  0x15   : > { %1093 = sst [smem:[#allocation13_spill]] %s1092_s25  ;;  %s1096_s1 = sld [smem:[#allocation16_spill]] }
  0x16   : > { %s1094_s26 = scalar_select %p873_p8, 1, 0 }
  0x17   : > { %p535_p9 = pneg %p873_p8 }
  0x19   : > { %p881_p10 = pnand %p535_p9, %p853_p1 }
  0x1b   : > { %s620_s5 = scalar_lea.hbm %s1096_s1, 512  ;;  %p622_p12 = pneg %p881_p10 }
  0x1c   : > { %p621_p11 = scmp.ne.s32.totalorder %s1096_s1, %s620_s5  ;;  %p627_p3 = scmp.lt.u32.totalorder %s620_s5, %s1096_s1 }
  0x1e   : > { %p623_p13 = pnand %p622_p12, %p621_p11 }
  0x20   : > { %p624_p0 = pneg %p623_p13 }
  0x22   : > { %p629_p5 = pnand %p627_p3, %p624_p0 }
  0x24   : > { %632 = shalt.err (!%p629_p5)
}
  0x25   : > { %s633_s10 = scalar_lea.vmem %s165_s28, 512  ;;  %p641_p1 = scmp.lt.s32.totalorder %s165_s28, %s165_s28 }
  0x26   : > { %p634_p7 = scmp.ne.s32.totalorder %s165_s28, %s633_s10  ;;  %p642_p4 = scmp.lt.s32.totalorder %s633_s10, %s633_s10 }
  0x28   : > { %p636_p9 = pnand %p634_p7, %p622_p12  ;;  %p643_p8 = por %p642_p4, %p641_p1 }
  0x2a   : > { %p637_p6 = pneg %p636_p9 }
  0x2c   : > { %p644_p2 = pnand %p643_p8, %p637_p6 }
  0x2e   : > { %647 = shalt.err (!%p644_p2)
}
  0x2f   : > { %s1081_s11 = smov 128   ;;  %s1082_s20 = smov 8  }
  0x30   : > { %538 = dma.hbm_to_vmem [thread:$0]  (!%p881_p10), %s1096_s1, 512, %s165_s28, [#allocation7], %s1081_s11, %s1081_s11, %s1082_s20  }
  0x31   : > { %s35_s30 = sadd.s32 1, %s772_s17  ;;  %s39_s4 = sadd.s32 1, %s776_s18 }
  0x32   : > { %p37_p1 = scmp.ge.s32.totalorder %s35_s30, 2  ;;  %s50_s5 = sadd.s32 1, %s760_s14 }
  0x33   : > { %p57_p2 = scmp.ne.s32.totalorder %s760_s14, %s756_s13  ;;  %p58_p4 = scmp.eq.s32.totalorder %s780_s19, 0 }
  0x34   : > { %s1119_s30 = smov (%p37_p1, %s35_s30), 0  ;;  %s1121_s4 = smov (!%p37_p1, %s39_s4), %s776_s18 }
  0x35   : > { %1097 = sst [smem:[#allocation14_spill]] %s1119_s30  ;;  %s44_s29 = ssub.s32 %s772_s17, %s1119_s30 }
  0x36   : > { %p41_p6 = scmp.ge.s32.totalorder %s1121_s4, 2  ;;  %p1098_p8 = scmp.ne.s32.totalorder %s1090_s23, 0 }
  0x37   : > { %p921_p10 = por %p58_p4, %p57_p2  ;;  %p548_p12 = scmp.lt.s32.totalorder %s780_s19, 4 }
  0x38   : > { %p917_p11 = por %p1098_p8, %p57_p2  ;;  %s1123_s4 = smov (%p41_p6, %s1121_s4), 0 }
  0x39   : > { %1101 = sst [smem:[#allocation15_spill]] %s1123_s4  ;;  %s181_s7 = sand.u32 1, %s760_s14  }
  0x3a   : > { %s486_s8 = sshll.u32 %s772_s17, 1  ;;  %s43_s9 = ssub.s32 %s776_s18, %s1123_s4 }
  0x3b   : > { %s45_s10 = sor.u32 %s44_s29, %s43_s9  ;;  %s485_s21 = sshll.u32 %s181_s7, 4 }
  0x3c   : > { %p48_p13 = scmp.eq.s32.totalorder %s45_s10, 0  ;;  %s487_s23 = sshll.u32 %s776_s18, 2 }
  0x3d   : > { %s185_s27 = scalar_lea.vmem [#allocation3], %s485_s21  ;;  %s192_s1 = sadd.s32 %s487_s23, %s486_s8 }
  0x3e   : > { %s195_s11 = sshll.u32 %s185_s27, 4  ;;  %s488_s30 = sshll.u32 %s192_s1, 7  ;;  %s936_s11 = int_to_ptr.vmem [resolvable:$true] %s195_s11 }
  0x3f   : > { %s934_s20 = scalar_select %p48_p13, %s760_s14, %s50_s5  }
  0x40   : > { %p942_p0 = pnand %p548_p12, %p921_p10  ;;  %s949_s29 = scalar_lea.hbm %s1073_s0, %s488_s30 }
  0x41   : > { %s951_s5 = scalar_lea.sflag [#allocation4], %s181_s7  ;;  %s648_s1 = scalar_lea.hbm %s949_s29, 256 }
  0x42   : > { %p649_p3 = scmp.ne.s32.totalorder %s949_s29, %s648_s1  ;;  %p650_p5 = pneg %p942_p0 }
  0x43   : > { %s653_s4 = scalar_lea.hbm %s1073_s0, 1024  ;;  %p654_p1 = scmp.lt.u32.totalorder %s949_s29, %s1073_s0 }
  0x44   : > { %p651_p7 = pnand %p650_p5, %p649_p3  ;;  %p655_p2 = scmp.lt.u32.totalorder %s653_s4, %s648_s1 }
  0x45   : > { %p657_p6 = scmp.lt.u32.totalorder %s648_s1, %s949_s29 }
  0x46   : > { %p652_p9 = pneg %p651_p7  ;;  %p656_p4 = por %p655_p2, %p654_p1 }
  0x48   : > { %p658_p8 = por %p657_p6, %p656_p4 }
  0x4a   : > { %p659_p10 = pnand %p658_p8, %p652_p9 }
  0x4c   : > { %662 = shalt.err (!%p659_p10)
}
  0x4d   : > { %s663_s7 = scalar_lea.vmem %s936_s11, 256  ;;  %s785_s9 = smov [#allocation3]  }
  0x4e   : > { %p664_p12 = scmp.ne.s32.totalorder %s936_s11, %s663_s7  ;;  %s668_s10 = sshll.u32 %s785_s9, 4  ;;  %s669_s10 = int_to_ptr.vmem [resolvable:$false] %s668_s10 }
  0x4f   : > { %s670_s21 = scalar_lea.vmem %s669_s10, 512  ;;  %p671_p7 = scmp.lt.s32.totalorder %s936_s11, %s669_s10 }
  0x50   : > { %p666_p13 = pnand %p664_p12, %p650_p5  ;;  %p672_p1 = scmp.lt.s32.totalorder %s670_s21, %s663_s7 }
  0x52   : > { %p667_p3 = pneg %p666_p13  ;;  %p673_p2 = por %p672_p1, %p671_p7 }
  0x54   : > { %p674_p4 = pnand %p673_p2, %p667_p3 }
  0x56   : > { %677 = shalt.err (!%p674_p4)
}
  0x57   : > { %s1103_s23 = smov 8   ;;  %s1104_s27 = smov 128  }
  0x58   : > { %542 = dma.hbm_to_vmem [thread:$0]  (!%p942_p0), %s949_s29, 256, %s936_s11, %s951_s5, %s1104_s27, %s1104_s27, %s1103_s23  }
  0x59   : > { %p1105_p5 = scmp.ne.s32.totalorder %s1094_s26, 0 }
  0x5a   : > { %s985_s1 = sand.u32 (!%p1105_p5), 1, %s756_s13   ;;  %p1106_p9 = scmp.ne.s32.totalorder (!%p1105_p5), %s1091_s24, 0 }
  0x5b   : > { %207 = sbr.rel (%p1105_p5) target bundleno = 351 (0x15f), region = 32  ;;  %s490_s28 = sshll.u32 (!%p1105_p5), %s985_s1, 4 }
  0x5c   : > { %s210_s17 = scalar_lea.sflag (!%p1105_p5), [#allocation4], %s985_s1  ;;  %s213_s25 = scalar_lea.vmem (!%p1105_p5), [#allocation3], %s490_s28 }
  0x62   : > { %739 = dma.done.wait (%p1106_p9), %s210_s17, 256  }
  0x63   : > { %741 = vsyncadd (%p1106_p9), %s210_s17, 4294967040  ;;  %p1107_p0 = scmp.ne.s32.totalorder %s1089_s22, 0 }
  0x65   : > { %743 = dma.done.wait (%p1107_p0), [#allocation7], 512  }
  0x66   : > { %745 = vsyncadd (%p1107_p0), [#allocation7], 4294966784  ;;  %vm254_vm0 = vcmask 261120   ;;  %v261_v0 = vld [vmem:[#allocation6] sm:$0xff]  ;;  %v262_v1 = vld [vmem:[#allocation6 + $0x8] sm:$0xff]  ;;  %s497_s22 = sshll.u32 %s764_s15, 1 }
  0x67   : > { %v263_v2 = vld [vmem:[#allocation6 + $0x10] sm:$0xff]  ;;  %v519_v3 = vpack.c.bf16 %v262_v1, %v261_v0  ;;  %v264_v4 = vld [vmem:[#allocation6 + $0x18] sm:$0xff]  ;;  %s498_s11 = sshll.u32 %s768_s16, 2  ;;  %s239_s4 = scalar_lea.vmem [#allocation8], %s490_s28 }
  0x68   : > { %v257_v5 = vld [vmem:[%s213_s25] sm:$0xff]  ;;  %v523_v6 = vpack.c.bf16 %v264_v4, %v263_v2  ;;  %v258_v8 = vld [vmem:[%s213_s25 + $0x8] sm:$0xff]  ;;  %s371_s29 = sadd.s32 %s498_s11, %s497_s22  ;;  %s374_s30 = sshll.u32 %s239_s4, 4  ;;  %s1017_s30 = int_to_ptr.vmem [resolvable:$true] %s374_s30 }
  0x69   : > { %516 = vmatprep.mubr.msk.f32.mxu0 %vm254_vm0, %v257_v5  ;;  %v493_v7 = vld [vmem:[%s1075_s2] ss:$0 sm:$0xff]  ;;  %520 = vmatprep.subr.bf16.mxu0 %v519_v3  ;;  %s499_s5 = sshll.u32 %s371_s29, 7  ;;  %s359_s15 = scalar_lea.sflag [#allocation5], %s985_s1 }
  0x6a   : > { %256 = vst.msk [vmem:[#allocation2 + $0x8] sm:$0xff] %vm254_vm0, %v493_v7  ;;  %255 = vst.msk [vmem:[#allocation2] sm:$0xff] %vm254_vm0, %v493_v7  ;;  %522 = vmatpush3.bf16.msra.mxu0 %v519_v3  ;;  %s1015_s9 = scalar_lea.hbm %s1076_s3, %s499_s5  ;;  %s678_s16 = scalar_lea.vmem %s1017_s30, 256 }
  0x6b   : > { %524 = vmatprep.subr.bf16.mxu0 %v523_v6  ;;  %p679_p6 = scmp.ne.s32.totalorder %s1017_s30, %s678_s16  ;;  %s786_s10 = smov [#allocation8]  }
  0x6c   : > { %s682_s21 = sshll.u32 %s786_s10, 4  ;;  %s683_s21 = int_to_ptr.vmem [resolvable:$false] %s682_s21 }
  0x6d   : > { %p680_p8 = pnand %p679_p6, %p917_p11  ;;  %s684_s23 = scalar_lea.vmem %s683_s21, 512 }
  0x6e   : > { %526 = vmatpush3.bf16.msra.mxu0 %v523_v6  ;;  %p685_p12 = scmp.lt.s32.totalorder %s1017_s30, %s683_s21  ;;  %p686_p13 = scmp.lt.s32.totalorder %s684_s23, %s678_s16 }
  0x6f   : > { %p681_p10 = pneg %p680_p8 }
  0x70   : > { %p687_p3 = por %p686_p13, %p685_p12 }
  0x71   : > { %517 = vmatmul.mubr.msk.f32.vlgmr.msra.gmra.mrb[0].mxu0 %vm254_vm0, %v258_v8  ;;  %v260_v9 = vld [vmem:[#allocation2 + $0x8] sm:$0xff]  ;;  %v259_v10 = vld [vmem:[#allocation2] sm:$0xff] }
  0x72   : > { %p688_p7 = pnand %p687_p3, %p681_p10 }
 0x144   : > { %v518_v11 = vpop.f32.mrb[0].mxu0 }
 0x145   : > { %v348_v12 = vadd.f32 %v518_v11, %v260_v9  ;;  %v338_v13 = vpop.f32.mrb[1].mxu0 }
 0x146   : > { %v347_v14 = vadd.f32 %v338_v13, %v259_v10 }
 0x147   : > { %350 = vst.msk [vmem:[#allocation2 + $0x8] sm:$0xff] %vm254_vm0, %v348_v12 }
 0x148   : > { %349 = vst.msk [vmem:[#allocation2] sm:$0xff] %vm254_vm0, %v347_v14 }
 0x14e   : > { %v355_v15 = vld [vmem:[#allocation2 + $0x8] sm:$0xff] }
 0x14f   : > { %v354_v16 = vld [vmem:[#allocation2] sm:$0xff]  ;;  %357 = vst.msk [vmem:[%s239_s4 + $0x8] sm:$0xff] %vm254_vm0, %v355_v15 }
 0x150   : > { %356 = vst.msk [vmem:[%s239_s4] sm:$0xff] %vm254_vm0, %v354_v16 }
 0x151   : > { %691 = shalt.err (!%p688_p7)
}
 0x152   : > { %s692_s27 = scalar_lea.hbm %s1015_s9, 256  ;;  %s696_s25 = scalar_lea.hbm %s1076_s3, 1024 }
 0x153   : > { %p693_p1 = scmp.ne.s32.totalorder %s1015_s9, %s692_s27  ;;  %p697_p5 = scmp.lt.u32.totalorder %s1015_s9, %s1076_s3 }
 0x154   : > { %p698_p9 = scmp.lt.u32.totalorder %s696_s25, %s692_s27  ;;  %p700_p6 = scmp.lt.u32.totalorder %s692_s27, %s1015_s9 }
 0x155   : > { %p694_p2 = pnand %p693_p1, %p917_p11 }
 0x156   : > { %p699_p0 = por %p698_p9, %p697_p5 }
 0x157   : > { %p695_p4 = pneg %p694_p2 }
 0x158   : > { %p701_p8 = por %p700_p6, %p699_p0 }
 0x15a   : > { %p702_p10 = pnand %p701_p8, %p695_p4 }
 0x15c   : > { %705 = shalt.err (!%p702_p10)
}
 0x15d   : > { %s787_s22 = smov 128   ;;  %s788_s11 = smov 8  }
 0x15e   : > { %533 = dma.vmem_to_hbm [thread:$0]  (%p917_p11), %s1017_s30, 256, %s1015_s9, %s359_s15, %s787_s22, %s787_s22, %s788_s11  }
 0x15f PF: > { %s1108_s29 = sld [smem:[#allocation13_spill]]  ;;  %p550_p12 = scmp.ge.s32.totalorder %s780_s19, 2 }
 0x160   : > { %s389_s5 = sand.u32 1, %s752_s12  }
 0x161   : > { %s390_s4 = scalar_lea.sflag [#allocation5], %s389_s5 }
 0x165   : > { %p1109_p13 = scmp.ne.s32.totalorder %s1108_s29, 0 }
 0x167   : > { %p544_p3 = pnand %p550_p12, %p1109_p13 }
 0x169   : > { %747 = dma.done.wait (!%p544_p3), %s390_s4, 256  }
 0x16a   : > { %749 = vsyncadd (!%p544_p3), %s390_s4, 4294967040  ;;  %s20_s19 = sadd.s32 1, %s780_s19   ;;  %s1110_s15 = sld [smem:[#allocation12_spill]] }
 0x16b   : > { %p17_p7 = scmp.ge.s32.totalorder %s20_s19, 6   ;;  %s1111_s17 = sld [smem:[#allocation14_spill]] }
 0x16c   : > { %s1112_s6 = sld [smem:[#allocation15_spill]]  ;;  %s1113_s12 = smov %s756_s13 }
 0x16d   : > { %s1114_s13 = smov %s760_s14  ;;  %s1115_s14 = smov %s934_s20 }
 0x16e   : > { %s1116_s16 = smov %s776_s18  ;;  %19 = sbr.rel (!%p17_p7) target bundleno = 10 (0xa), region = 90 }
 0x172   : > { %s1117_s18 = smov %s1112_s6 }
 0x175   :  { %395 = vsyncpa [#allocation4], 1 }
 0x176   :  { %397 = vsyncpa [#allocation4 + $0x1], 1 }
 0x177   :  { %398 = vsyncpa [#allocation7], 1 }
 0x178   :  { %399 = vsyncpa [#allocation5], 1 }
 0x179   :  { %401 = vsyncpa [#allocation5 + $0x1], 1 }

</bundles_post_ra>
